<compile_context>
chip_gen: v5e
topology: v5e:2x2
jax: 0.10.0
libtpu: 0.0.40
codegen_flags: <defaults>
</compile_context>

<pallas_src>
import math
import functools

import numpy as np
import jax
import jax.numpy as jnp
from jax.experimental import pallas as pl
from jax.experimental.pallas import tpu as pltpu


# ---------------------------------------------------------------------------
# Gaussian basis / G matrix construction (host-side parameter glue)
# ---------------------------------------------------------------------------
def psi_evaluate(t, mu, sigma):
    return jnp.exp(-0.5 * ((t - mu) / sigma) ** 2) / (math.sqrt(2.0 * math.pi) * sigma)


def get_gaussian_basis(nb_basis):
    sigmas = jnp.array([0.005, 0.01], dtype=jnp.float32)
    n_mu = nb_basis // sigmas.shape[0]
    mus = jnp.linspace(0.0, 1.0, n_mu, dtype=jnp.float32)
    basis_mu = jnp.repeat(mus, sigmas.shape[0])
    basis_sigma = jnp.tile(sigmas, n_mu)
    return basis_mu, basis_sigma


def compute_G(L, basis_mu, basis_sigma, ridge=0.5):
    shift = 1.0 / (2.0 * L)
    positions = jnp.linspace(-0.5 + shift, 1.5 - shift, 2 * L, dtype=jnp.float32)
    F = psi_evaluate(positions[:, None], basis_mu[None, :], basis_sigma[None, :]).T
    N = basis_mu.shape[0]
    A = F @ F.T + ridge * jnp.eye(N, dtype=jnp.float32)
    G = F.T @ jnp.linalg.inv(A)            # [2L, N]
    return G[L // 2: -(L // 2)]            # [L, N]


# ---------------------------------------------------------------------------
# Packed weight slab layout (single operand -> single DMA for the whole call)
# ---------------------------------------------------------------------------
def slab_layout(H, L, N, RHQ):
    lay = {}
    r = 0

    def add(name, nrows, width):
        nonlocal r
        lay[name] = (r, nrows, width)
        r += nrows

    add("wc_shift", 2 * H, H)   # conv taps for [k_{t-1} | k_{t+1}] lanes, input-major
    add("wc_cur", H, H)         # conv tap for k_t, input-major
    add("wkv", H, 2 * H)        # [Wk^T | Wv^T]
    add("wot", H, H)            # Wo^T
    add("gst", N, L)            # Gs^T
    add("wms", N, 2)            # [w_mu | w_sigma] as columns
    add("wmst", 2, N)           # transposed copy (lane-major stats output)
    add("conv_b", 1, H)
    add("bmu", 1, N)
    add("bsig_sq", 1, N)        # basis_sigma ** 2 (pre-squared host side)
    add("hmask", RHQ, H)        # block-diag head mask: row r <-> head r // qlen
    width = max(2 * H, H, L, N, 2)
    total = ((r + 7) // 8) * 8
    return lay, total, width


def build_slab(params, Gs, basis_mu, basis_sigma, H, L, N, NH, QLEN):
    RHQ = NH * QLEN
    lay, total, width = slab_layout(H, L, N, RHQ)
    slab = jnp.zeros((total, width), jnp.float32)

    def put(s, name, val):
        r0, nr, w = lay[name]
        return s.at[r0:r0 + nr, 0:w].set(jnp.asarray(val, jnp.float32).reshape(nr, w))

    cw = params["conv_w"]                                   # [H_out, H_in, 3]
    slab = put(slab, "wc_shift",
               jnp.concatenate([cw[:, :, 0].T, cw[:, :, 2].T], axis=0))   # [2H, H]
    slab = put(slab, "wc_cur", cw[:, :, 1].T)
    slab = put(slab, "wkv", jnp.concatenate([params["Wk"].T, params["Wv"].T], axis=1))
    slab = put(slab, "wot", params["Wo"].T)
    slab = put(slab, "gst", Gs.T)
    wms = jnp.stack([params["w_mu"][0], params["w_sigma"][0]], axis=1)    # [N, 2]
    slab = put(slab, "wms", wms)
    slab = put(slab, "wmst", wms.T)
    slab = put(slab, "conv_b", params["conv_b"])
    slab = put(slab, "bmu", basis_mu)
    slab = put(slab, "bsig_sq", basis_sigma ** 2)
    head_of_row = np.repeat(np.arange(NH), QLEN)
    head_of_col = np.repeat(np.arange(NH), H // NH)
    hmask = (head_of_row[:, None] == head_of_col[None, :]).astype(np.float32)
    slab = put(slab, "hmask", hmask)
    return slab


# ---------------------------------------------------------------------------
# Pallas kernel: one batch block per grid step, everything fused.
# ---------------------------------------------------------------------------
def lta_kernel(k_ref, ks_ref, q_ref, w_ref, out_ref, *, nh, qlen, n_basis):
    f32 = jnp.float32
    BT, L, H = k_ref.shape
    N = n_basis
    RHQ = nh * qlen
    lay, _, _ = slab_layout(H, L, N, RHQ)

    def piece(name):
        r0, nr, w = lay[name]
        return w_ref[r0:r0 + nr, 0:w]

    # ---- masked-CNN gate: Conv1d(H, H, 3, padding=1).  The wrapper ships the
    # time-shifted taps as extra lanes, so this is two matmuls with no copies.
    k2 = k_ref[...].reshape(BT * L, H)                            # [BT*L, H]
    conv = (jnp.dot(ks_ref[...].reshape(BT * L, 2 * H), piece("wc_shift"),
                    preferred_element_type=f32)
            + jnp.dot(k2, piece("wc_cur"), preferred_element_type=f32)
            + piece("conv_b"))
    kk3 = (k2 * jax.nn.sigmoid(conv)).reshape(BT, L, H)

    # ---- value_function: B[b, n, h] = sum_l Gs[l, n] * kk[b, l, h]
    gst = jnp.broadcast_to(piece("gst")[None], (BT, N, L))
    bmat = jnp.einsum("bnl,blh->bnh", gst, kk3, preferred_element_type=f32)
    out_ref[:, qlen:qlen + N, :] = bmat                           # new_B_past rows

    # ---- fused key / value projection: [BT*N, H] @ [H, 2H]
    kv = jnp.dot(bmat.reshape(BT * N, H), piece("wkv"), preferred_element_type=f32)
    keys3 = kv[:, 0:H].reshape(BT, N, H)
    values3 = kv[:, H:2 * H].reshape(BT, N, H)

    # ---- scores for every (head, query) row at once: query arrives pre-scaled
    # and block-diagonalised host side, so this is a single batched einsum.
    q_bd = q_ref[...]                                             # [BT, RHQ, H]
    scores = jnp.einsum("bri,bni->brn", q_bd, keys3, preferred_element_type=f32)

    # ---- affine mu / sigma^2 heads (row-major orientation, used by the density)
    ms = jnp.dot(scores.reshape(BT * RHQ, N), piece("wms"), preferred_element_type=f32)
    mu = jax.nn.sigmoid(ms[:, 0:1])                               # [BT*RHQ, 1]
    sig = jnp.maximum(jax.nn.softplus(ms[:, 1:2]), 1e-4)

    # ---- ContinuousSoftmax: r_j = N(mu; basis_mu_j, sigma^2 + basis_sigma_j^2)
    denom = sig + piece("bsig_sq")                                # [BT*RHQ, N]
    r = (jnp.exp(-0.5 * (mu - piece("bmu")) ** 2 / denom)
         * jax.lax.rsqrt(2.0 * math.pi * denom))
    r3 = r.reshape(BT, RHQ, N)

    # ---- context: per-head block extracted with the static head mask, then Wo^T
    hmask = piece("hmask")                                        # [RHQ, H]
    ctx_wide = jnp.einsum("brn,bni->bri", r3, values3, preferred_element_type=f32)
    cm = (ctx_wide * hmask[None]).reshape(BT, nh, qlen, H)
    ctx_pre = cm[:, 0]
    for h in range(1, nh):                                        # tiny static sum, no concat
        ctx_pre = ctx_pre + cm[:, h]
    ctx = jnp.dot(ctx_pre.reshape(BT * qlen, H), piece("wot"), preferred_element_type=f32)
    out_ref[:, 0:qlen, :] = ctx.reshape(BT, qlen, H)

    # ---- mu / sigma^2 output rows (lane-major via a second tiny projection)
    wmst = jnp.broadcast_to(piece("wmst")[None], (BT, 2, N))
    mst = jnp.einsum("bkn,brn->bkr", wmst, scores, preferred_element_type=f32)  # [BT,2,RHQ]
    mu_t = jax.nn.sigmoid(mst[:, 0:1, :])
    sig_t = jnp.maximum(jax.nn.softplus(mst[:, 1:2, :]), 1e-4)
    if RHQ < H:                                                   # static config branch
        out_ref[:, qlen + N:qlen + N + 2, :] = jnp.zeros((BT, 2, H), f32)
    out_ref[:, qlen + N:qlen + N + 1, 0:RHQ] = mu_t
    out_ref[:, qlen + N + 1:qlen + N + 2, 0:RHQ] = sig_t


# ---------------------------------------------------------------------------
# Wrapper
# ---------------------------------------------------------------------------
def long_term_attention(k, query, params, Gs, basis_mu, basis_sigma, sigma_0, mu_0):
    B, L, H = k.shape
    _, NH, QLEN, HD = query.shape
    N = Gs.shape[1]
    RHQ = NH * QLEN
    assert NH * HD == H
    assert RHQ <= H, "merged stats rows assume n_heads * qlen <= hidden size"
    R_OUT = QLEN + N + 2

    k = k.astype(jnp.float32)

    # Host-side prep (tiny XLA ops, outside the kernel):
    #  * pre-shifted conv taps [k_{t-1} | k_{t+1}] so the kernel never concatenates
    zrow = jnp.zeros((B, 1, H), jnp.float32)
    k_prev = jnp.concatenate([zrow, k[:, :L - 1, :]], axis=1)
    k_next = jnp.concatenate([k[:, 1:, :], zrow], axis=1)
    k_shift = jnp.concatenate([k_prev, k_next], axis=-1)          # [B, L, 2H]

    #  * pre-scaled block-diagonal query rows: row r = h*QLEN+q holds
    #    query[b,h,q,:]/sqrt(HD) in head-h's lane slice, zero elsewhere.
    eye = jnp.eye(NH, dtype=jnp.float32)
    q_bd = jnp.einsum("bhqd,hg->bhqgd",
                      query.astype(jnp.float32) * (1.0 / math.sqrt(HD)),
                      eye).reshape(B, RHQ, H)

    slab = build_slab(params, Gs, basis_mu, basis_sigma, H, L, N, NH, QLEN)

    # Batch block: at most two grid steps (keeps both v7x TensorCores busy);
    # otherwise the whole batch is processed inside a single grid step.
    if B > 1 and B % 2 == 0:
        bt, steps = B // 2, 2
    else:
        bt, steps = B, 1

    flops = 2 * B * (3 * L * H * H + N * L * H + 2 * N * H * H + RHQ * H * N
                     + 2 * RHQ * N + RHQ * N * H + QLEN * H * H + 2 * RHQ * N)
    transcendentals = B * (L * H + 2 * RHQ * N + 8 * RHQ)
    bytes_accessed = 4 * (B * (3 * L + RHQ + R_OUT) * H + int(slab.size))

    out = pl.pallas_call(
        functools.partial(lta_kernel, nh=NH, qlen=QLEN, n_basis=N),
        grid=(steps,),
        in_specs=[
            pl.BlockSpec((bt, L, H), lambda b: (b, 0, 0)),        # memory k
            pl.BlockSpec((bt, L, 2 * H), lambda b: (b, 0, 0)),    # pre-shifted conv taps
            pl.BlockSpec((bt, RHQ, H), lambda b: (b, 0, 0)),      # block-diag query
            pl.BlockSpec(slab.shape, lambda b: (0, 0)),           # packed weight slab (loaded once)
        ],
        out_specs=pl.BlockSpec((bt, R_OUT, H), lambda b: (b, 0, 0)),
        out_shape=jax.ShapeDtypeStruct((B, R_OUT, H), jnp.float32),
        compiler_params=pltpu.CompilerParams(dimension_semantics=("parallel",)),
        cost_estimate=pl.CostEstimate(flops=flops, transcendentals=transcendentals,
                                      bytes_accessed=bytes_accessed),
    )(k, k_shift, q_bd, slab)

    context = out[:, :QLEN, :]
    new_b_past = out[:, QLEN:QLEN + N, :]
    mu_flat = out[:, QLEN + N, :RHQ]
    sigma_sq_flat = out[:, QLEN + N + 1, :RHQ]
    # KL regularizer (mu_0 == 0 branch) is pure elementwise -> computed here.
    s0 = float(sigma_0) ** 2
    kl_reg = 0.5 * (sigma_sq_flat / s0 - jnp.log(sigma_sq_flat / s0) - 1.0
                    + (mu_flat - mu_0) ** 2 / s0)
    return context, new_b_past, mu_flat, jnp.sqrt(sigma_sq_flat), kl_reg


# ---------------------------------------------------------------------------
# Pure-JAX reference (mirrors the PyTorch forward) for a correctness check
# ---------------------------------------------------------------------------
def reference_forward(k, query, params, Gs, basis_mu, basis_sigma, sigma_0, mu_0):
    Bsz, L, H = k.shape
    _, NH, QLEN, HD = query.shape
    N = Gs.shape[1]
    kt = jnp.transpose(k, (0, 2, 1))                              # [B, H, L]
    kp = jnp.pad(kt, ((0, 0), (0, 0), (1, 1)))
    conv = sum(jnp.einsum("oi,bit->bot", params["conv_w"][:, :, j], kp[:, :, j:j + L])
               for j in range(3)) + params["conv_b"][None, :, None]
    kk = kt * jax.nn.sigmoid(conv)
    Bv = jnp.einsum("bhl,ln->bhn", kk, Gs)
    Bmat = jnp.transpose(Bv, (0, 2, 1))                           # [B, N, H]
    keys = (Bmat @ params["Wk"].T).reshape(Bsz, N, NH, HD).transpose(0, 2, 1, 3)
    values = (Bmat @ params["Wv"].T).reshape(Bsz, N, NH, HD).transpose(0, 2, 1, 3)
    scores = jnp.einsum("bhqd,bhnd->bhqn", query / math.sqrt(HD), keys)
    mu = jax.nn.sigmoid(jnp.einsum("bhqn,n->bhq", scores, params["w_mu"][0]))[..., None]
    sig = jnp.maximum(jax.nn.softplus(
        jnp.einsum("bhqn,n->bhq", scores, params["w_sigma"][0]))[..., None], 1e-4)
    denom = sig + basis_sigma ** 2
    r = jnp.exp(-0.5 * (mu - basis_mu) ** 2 / denom) / jnp.sqrt(2.0 * math.pi * denom)
    context = jnp.einsum("bhqn,bhnd->bhqd", r, values)
    context = context.transpose(0, 2, 1, 3).reshape(Bsz, QLEN, H) @ params["Wo"].T
    mu_flat = mu.reshape(Bsz, -1)
    sig_flat = sig.reshape(Bsz, -1)
    s0 = sigma_0 ** 2
    kl = 0.5 * (sig_flat / s0 - jnp.log(sig_flat / s0) - 1.0 + (mu_flat - mu_0) ** 2 / s0)
    return context, Bmat, mu_flat, jnp.sqrt(sig_flat), kl


# ---------------------------------------------------------------------------
def init_params(key, H, N):
    ks = jax.random.split(key, 7)
    s = 1.0 / math.sqrt(H)
    return dict(
        Wk=jax.random.normal(ks[0], (H, H), jnp.float32) * s,
        Wv=jax.random.normal(ks[1], (H, H), jnp.float32) * s,
        Wo=jax.random.normal(ks[2], (H, H), jnp.float32) * s,
        conv_w=jax.random.normal(ks[3], (H, H, 3), jnp.float32) * (1.0 / math.sqrt(3 * H)),
        conv_b=jax.random.normal(ks[4], (H,), jnp.float32) * 0.1,
        w_mu=jax.random.normal(ks[5], (1, N), jnp.float32) * (1.0 / math.sqrt(N)),
        w_sigma=jax.random.normal(ks[6], (1, N), jnp.float32) * (1.0 / math.sqrt(N)),
    )


if __name__ == "__main__":
    B, L, NH, HD, QLEN, N = 2, 16, 4, 8, 8, 16
    H = NH * HD
    SIGMA_0, MU_0 = 1.0, 0.0

    key = jax.random.PRNGKey(0)
    kparam, kmem, kq = jax.random.split(key, 3)
    params = init_params(kparam, H, N)
    basis_mu, basis_sigma = get_gaussian_basis(N)
    Gs = compute_G(L, basis_mu, basis_sigma)

    k = jax.random.normal(kmem, (B, L, H), jnp.float32)            # memory [B, L, H]
    query = jax.random.normal(kq, (B, NH, QLEN, HD), jnp.float32)  # [B, nh, qlen, hd]

    outs = long_term_attention(k, query, params, Gs, basis_mu, basis_sigma, SIGMA_0, MU_0)
    outs = jax.block_until_ready(outs)

    refs = reference_forward(k, query, params, Gs, basis_mu, basis_sigma, SIGMA_0, MU_0)
    for o, r_ in zip(outs, refs):
        np.testing.assert_allclose(np.asarray(o), np.asarray(r_), rtol=5e-2, atol=5e-2)

    print("KERNEL_OK")
</pallas_src>

<mosaic_0001>
module attributes {stable_mosaic.version = 11 : i64} {
  func.func @lta_kernel(%arg0: i32, %arg1: memref<1x16x32xf32, #tpu.memory_space<vmem>>, %arg2: memref<1x16x64xf32, #tpu.memory_space<vmem>>, %arg3: memref<1x32x32xf32, #tpu.memory_space<vmem>>, %arg4: memref<232x64xf32, #tpu.memory_space<vmem>>, %arg5: memref<1x26x32xf32, #tpu.memory_space<vmem>>) attributes {dimension_semantics = [#tpu.dimension_semantics<parallel>], iteration_bounds = array<i64: 2>, scalar_prefetch = 0 : i64, scratch_operands = 0 : i64, tpu.core_type = #tpu.core_type<tc>, window_params = [{transform_indices = @transform_0, window_bounds = array<i64: 1, 16, 32>}, {transform_indices = @transform_1, window_bounds = array<i64: 1, 16, 64>}, {transform_indices = @transform_2, window_bounds = array<i64: 1, 32, 32>}, {pipeline_mode = #tpu.pipeline_mode<synchronous>, transform_indices = @transform_3, window_bounds = array<i64: 232, 64>}, {transform_indices = @transform_4, window_bounds = array<i64: 1, 26, 32>}]} {
    %c0 = arith.constant 0 : index
    %c0_0 = arith.constant 0 : index
    %c0_1 = arith.constant 0 : index
    %0 = vector.load %arg1[%c0, %c0_0, %c0_1] : memref<1x16x32xf32, #tpu.memory_space<vmem>>, vector<1x16x32xf32>
    %1 = vector.shape_cast %0 : vector<1x16x32xf32> to vector<16x32xf32>
    %c0_2 = arith.constant 0 : index
    %c0_3 = arith.constant 0 : index
    %c0_4 = arith.constant 0 : index
    %2 = vector.load %arg2[%c0_2, %c0_3, %c0_4] : memref<1x16x64xf32, #tpu.memory_space<vmem>>, vector<1x16x64xf32>
    %3 = vector.shape_cast %2 : vector<1x16x64xf32> to vector<16x64xf32>
    %c0_5 = arith.constant 0 : index
    %c0_6 = arith.constant 0 : index
    %4 = vector.load %arg4[%c0_5, %c0_6] : memref<232x64xf32, #tpu.memory_space<vmem>>, vector<64x32xf32>
    %cst = arith.constant dense<0.000000e+00> : vector<16x32xf32>
    %5 = tpu.matmul %3, %4, %cst {dimension_numbers = #tpu.dot_dimension_numbers<[1], [0], [0], [1], [0, 0, 1, 1], [], []>} : vector<16x64xf32>, vector<64x32xf32>, vector<16x32xf32> -> vector<16x32xf32>
    %c64 = arith.constant 64 : index
    %c0_7 = arith.constant 0 : index
    %6 = vector.load %arg4[%c64, %c0_7] : memref<232x64xf32, #tpu.memory_space<vmem>>, vector<32x32xf32>
    %cst_8 = arith.constant dense<0.000000e+00> : vector<16x32xf32>
    %7 = tpu.matmul %1, %6, %cst_8 {dimension_numbers = #tpu.dot_dimension_numbers<[1], [0], [0], [1], [0, 0, 1, 1], [], []>} : vector<16x32xf32>, vector<32x32xf32>, vector<16x32xf32> -> vector<16x32xf32>
    %8 = arith.addf %5, %7 : vector<16x32xf32>
    %c194 = arith.constant 194 : index
    %c0_9 = arith.constant 0 : index
    %9 = vector.load %arg4[%c194, %c0_9] : memref<232x64xf32, #tpu.memory_space<vmem>>, vector<1x32xf32>
    %10 = vector.broadcast %9 : vector<1x32xf32> to vector<16x32xf32>
    %11 = arith.addf %8, %10 : vector<16x32xf32>
    %12 = arith.negf %11 : vector<16x32xf32>
    %13 = math.exp %12 : vector<16x32xf32>
    %cst_10 = arith.constant 1.000000e+00 : f32
    %14 = vector.broadcast %cst_10 : f32 to vector<16x32xf32>
    %15 = arith.addf %14, %13 : vector<16x32xf32>
    %16 = arith.divf %14, %15 : vector<16x32xf32>
    %17 = arith.mulf %1, %16 : vector<16x32xf32>
    %18 = vector.shape_cast %17 : vector<16x32xf32> to vector<1x16x32xf32>
    %c160 = arith.constant 160 : index
    %c0_11 = arith.constant 0 : index
    %19 = vector.load %arg4[%c160, %c0_11] : memref<232x64xf32, #tpu.memory_space<vmem>>, vector<16x16xf32>
    %20 = vector.shape_cast %19 : vector<16x16xf32> to vector<1x16x16xf32>
    "tpu.trace_start"() <{level = 10 : i32, message = "bnl,blh->bnh"}> : () -> ()
    %cst_12 = arith.constant dense<0.000000e+00> : vector<1x16x32xf32>
    %21 = tpu.matmul %20, %18, %cst_12 {dimension_numbers = #tpu.dot_dimension_numbers<[2], [1], [1], [2], [0, 0, 0, 1, 1, 2], [0], [0]>} : vector<1x16x16xf32>, vector<1x16x32xf32>, vector<1x16x32xf32> -> vector<1x16x32xf32>
    "tpu.trace_stop"() : () -> ()
    %c0_13 = arith.constant 0 : index
    %c8 = arith.constant 8 : index
    %c0_14 = arith.constant 0 : index
    %22 = vector.load %arg5[%c0_13, %c8, %c0_14] : memref<1x26x32xf32, #tpu.memory_space<vmem>>, vector<1x16x32xf32>
    tpu.vector_store %arg5[%c0_13, %c8, %c0_14], %21 {strides = array<i32>} : memref<1x26x32xf32, #tpu.memory_space<vmem>>, vector<1x16x32xf32>,
    %23 = vector.shape_cast %21 : vector<1x16x32xf32> to vector<16x32xf32>
    %c96 = arith.constant 96 : index
    %c0_15 = arith.constant 0 : index
    %24 = vector.load %arg4[%c96, %c0_15] : memref<232x64xf32, #tpu.memory_space<vmem>>, vector<32x64xf32>
    %cst_16 = arith.constant dense<0.000000e+00> : vector<16x64xf32>
    %25 = tpu.matmul %23, %24, %cst_16 {dimension_numbers = #tpu.dot_dimension_numbers<[1], [0], [0], [1], [0, 0, 1, 1], [], []>} : vector<16x32xf32>, vector<32x64xf32>, vector<16x64xf32> -> vector<16x64xf32>
    %26 = vector.extract_strided_slice %25 {offsets = [0, 0], sizes = [16, 32], strides = [1, 1]} : vector<16x64xf32> to vector<16x32xf32>
    %27 = vector.shape_cast %26 : vector<16x32xf32> to vector<1x16x32xf32>
    %28 = vector.extract_strided_slice %25 {offsets = [0, 32], sizes = [16, 32], strides = [1, 1]} : vector<16x64xf32> to vector<16x32xf32>
    %29 = vector.shape_cast %28 : vector<16x32xf32> to vector<1x16x32xf32>
    %c0_17 = arith.constant 0 : index
    %c0_18 = arith.constant 0 : index
    %c0_19 = arith.constant 0 : index
    %30 = vector.load %arg3[%c0_17, %c0_18, %c0_19] : memref<1x32x32xf32, #tpu.memory_space<vmem>>, vector<1x32x32xf32>
    "tpu.trace_start"() <{level = 10 : i32, message = "bri,bni->brn"}> : () -> ()
    %cst_20 = arith.constant dense<0.000000e+00> : vector<1x32x16xf32>
    %31 = tpu.matmul %30, %27, %cst_20 {dimension_numbers = #tpu.dot_dimension_numbers<[2], [2], [1], [1], [0, 0, 0, 1, 1, 1], [0], [0]>} : vector<1x32x32xf32>, vector<1x16x32xf32>, vector<1x32x16xf32> -> vector<1x32x16xf32>
    "tpu.trace_stop"() : () -> ()
    %32 = vector.shape_cast %31 : vector<1x32x16xf32> to vector<32x16xf32>
    %c176 = arith.constant 176 : index
    %c0_21 = arith.constant 0 : index
    %33 = vector.load %arg4[%c176, %c0_21] : memref<232x64xf32, #tpu.memory_space<vmem>>, vector<16x2xf32>
    %cst_22 = arith.constant dense<0.000000e+00> : vector<32x2xf32>
    %34 = tpu.matmul %32, %33, %cst_22 {dimension_numbers = #tpu.dot_dimension_numbers<[1], [0], [0], [1], [0, 0, 1, 1], [], []>} : vector<32x16xf32>, vector<16x2xf32>, vector<32x2xf32> -> vector<32x2xf32>
    %35 = vector.extract_strided_slice %34 {offsets = [0, 0], sizes = [32, 1], strides = [1, 1]} : vector<32x2xf32> to vector<32x1xf32>
    %36 = arith.negf %35 : vector<32x1xf32>
    %37 = math.exp %36 : vector<32x1xf32>
    %cst_23 = arith.constant 1.000000e+00 : f32
    %38 = vector.broadcast %cst_23 : f32 to vector<32x1xf32>
    %39 = arith.addf %38, %37 : vector<32x1xf32>
    %40 = arith.divf %38, %39 : vector<32x1xf32>
    %41 = vector.extract_strided_slice %34 {offsets = [0, 1], sizes = [32, 1], strides = [1, 1]} : vector<32x2xf32> to vector<32x1xf32>
    %cst_24 = arith.constant 0.000000e+00 : f32
    %42 = vector.broadcast %cst_24 : f32 to vector<32x1xf32>
    %43 = arith.maximumf %41, %42 : vector<32x1xf32>
    %44 = vector.broadcast %cst_24 : f32 to vector<32x1xf32>
    %45 = arith.subf %41, %44 : vector<32x1xf32>
    %46 = arith.cmpf one, %45, %45 : vector<32x1xf32>
    %47 = vector.broadcast %cst_24 : f32 to vector<32x1xf32>
    %48 = arith.addf %41, %47 : vector<32x1xf32>
    %49 = math.absf %45 : vector<32x1xf32>
    %cst_25 = arith.constant 0.000000e+00 : f32
    %50 = vector.broadcast %cst_25 : f32 to vector<32x1xf32>
    %51 = arith.subf %50, %49 : vector<32x1xf32>
    %52 = math.exp %51 : vector<32x1xf32>
    %53 = math.log1p %52 : vector<32x1xf32>
    %54 = arith.addf %43, %53 : vector<32x1xf32>
    %55 = arith.select %46, %48, %54 : vector<32x1xi1>, vector<32x1xf32>
    %cst_26 = arith.constant 9.99999974E-5 : f32
    %56 = vector.broadcast %cst_26 : f32 to vector<32x1xf32>
    %57 = arith.maximumf %55, %56 : vector<32x1xf32>
    %c196 = arith.constant 196 : index
    %c0_27 = arith.constant 0 : index
    %58 = vector.load %arg4[%c196, %c0_27] : memref<232x64xf32, #tpu.memory_space<vmem>>, vector<1x16xf32>
    %59 = vector.broadcast %57 : vector<32x1xf32> to vector<32x16xf32>
    %60 = vector.broadcast %58 : vector<1x16xf32> to vector<32x16xf32>
    %61 = arith.addf %59, %60 : vector<32x16xf32>
    %c195 = arith.constant 195 : index
    %c0_28 = arith.constant 0 : index
    %62 = vector.load %arg4[%c195, %c0_28] : memref<232x64xf32, #tpu.memory_space<vmem>>, vector<1x16xf32>
    %63 = vector.broadcast %40 : vector<32x1xf32> to vector<32x16xf32>
    %64 = vector.broadcast %62 : vector<1x16xf32> to vector<32x16xf32>
    %65 = arith.subf %63, %64 : vector<32x16xf32>
    %66 = arith.mulf %65, %65 : vector<32x16xf32>
    %cst_29 = arith.constant -5.000000e-01 : f32
    %67 = vector.broadcast %cst_29 : f32 to vector<32x16xf32>
    %68 = arith.mulf %67, %66 : vector<32x16xf32>
    %69 = arith.divf %68, %61 : vector<32x16xf32>
    %70 = math.exp %69 : vector<32x16xf32>
    %cst_30 = arith.constant 6.28318548 : f32
    %71 = vector.broadcast %cst_30 : f32 to vector<32x16xf32>
    %72 = arith.mulf %71, %61 : vector<32x16xf32>
    %73 = math.rsqrt %72 : vector<32x16xf32>
    %74 = arith.mulf %70, %73 : vector<32x16xf32>
    %75 = vector.shape_cast %74 : vector<32x16xf32> to vector<1x32x16xf32>
    %c197 = arith.constant 197 : index
    %c0_31 = arith.constant 0 : index
    %76 = vector.load %arg4[%c197, %c0_31] : memref<232x64xf32, #tpu.memory_space<vmem>>, vector<32x32xf32>
    "tpu.trace_start"() <{level = 10 : i32, message = "brn,bni->bri"}> : () -> ()
    %cst_32 = arith.constant dense<0.000000e+00> : vector<1x32x32xf32>
    %77 = tpu.matmul %75, %29, %cst_32 {dimension_numbers = #tpu.dot_dimension_numbers<[2], [1], [1], [2], [0, 0, 0, 1, 1, 2], [0], [0]>} : vector<1x32x16xf32>, vector<1x16x32xf32>, vector<1x32x32xf32> -> vector<1x32x32xf32>
    "tpu.trace_stop"() : () -> ()
    %78 = vector.shape_cast %76 : vector<32x32xf32> to vector<1x32x32xf32>
    %79 = arith.mulf %77, %78 : vector<1x32x32xf32>
    %80 = vector.shape_cast %79 : vector<1x32x32xf32> to vector<1x4x8x32xf32>
    %81 = vector.extract_strided_slice %80 {offsets = [0, 0, 0, 0], sizes = [1, 1, 8, 32], strides = [1, 1, 1, 1]} : vector<1x4x8x32xf32> to vector<1x1x8x32xf32>
    %82 = vector.shape_cast %81 : vector<1x1x8x32xf32> to vector<1x8x32xf32>
    %83 = vector.extract_strided_slice %80 {offsets = [0, 1, 0, 0], sizes = [1, 1, 8, 32], strides = [1, 1, 1, 1]} : vector<1x4x8x32xf32> to vector<1x1x8x32xf32>
    %84 = vector.shape_cast %83 : vector<1x1x8x32xf32> to vector<1x8x32xf32>
    %85 = arith.addf %82, %84 : vector<1x8x32xf32>
    %86 = vector.extract_strided_slice %80 {offsets = [0, 2, 0, 0], sizes = [1, 1, 8, 32], strides = [1, 1, 1, 1]} : vector<1x4x8x32xf32> to vector<1x1x8x32xf32>
    %87 = vector.shape_cast %86 : vector<1x1x8x32xf32> to vector<1x8x32xf32>
    %88 = arith.addf %85, %87 : vector<1x8x32xf32>
    %89 = vector.extract_strided_slice %80 {offsets = [0, 3, 0, 0], sizes = [1, 1, 8, 32], strides = [1, 1, 1, 1]} : vector<1x4x8x32xf32> to vector<1x1x8x32xf32>
    %90 = vector.shape_cast %89 : vector<1x1x8x32xf32> to vector<1x8x32xf32>
    %91 = arith.addf %88, %90 : vector<1x8x32xf32>
    %92 = vector.shape_cast %91 : vector<1x8x32xf32> to vector<8x32xf32>
    %c128 = arith.constant 128 : index
    %c0_33 = arith.constant 0 : index
    %93 = vector.load %arg4[%c128, %c0_33] : memref<232x64xf32, #tpu.memory_space<vmem>>, vector<32x32xf32>
    %cst_34 = arith.constant dense<0.000000e+00> : vector<8x32xf32>
    %94 = tpu.matmul %92, %93, %cst_34 {dimension_numbers = #tpu.dot_dimension_numbers<[1], [0], [0], [1], [0, 0, 1, 1], [], []>} : vector<8x32xf32>, vector<32x32xf32>, vector<8x32xf32> -> vector<8x32xf32>
    %95 = vector.shape_cast %94 : vector<8x32xf32> to vector<1x8x32xf32>
    %c0_35 = arith.constant 0 : index
    %c0_36 = arith.constant 0 : index
    %c0_37 = arith.constant 0 : index
    %96 = vector.load %arg5[%c0_35, %c0_36, %c0_37] : memref<1x26x32xf32, #tpu.memory_space<vmem>>, vector<1x8x32xf32>
    tpu.vector_store %arg5[%c0_35, %c0_36, %c0_37], %95 {strides = array<i32>} : memref<1x26x32xf32, #tpu.memory_space<vmem>>, vector<1x8x32xf32>,
    %c192 = arith.constant 192 : index
    %c0_38 = arith.constant 0 : index
    %97 = vector.load %arg4[%c192, %c0_38] : memref<232x64xf32, #tpu.memory_space<vmem>>, vector<2x16xf32>
    %98 = vector.shape_cast %97 : vector<2x16xf32> to vector<1x2x16xf32>
    "tpu.trace_start"() <{level = 10 : i32, message = "bkn,brn->bkr"}> : () -> ()
    %cst_39 = arith.constant dense<0.000000e+00> : vector<1x2x32xf32>
    %99 = tpu.matmul %98, %31, %cst_39 {dimension_numbers = #tpu.dot_dimension_numbers<[2], [2], [1], [1], [0, 0, 0, 1, 1, 1], [0], [0]>} : vector<1x2x16xf32>, vector<1x32x16xf32>, vector<1x2x32xf32> -> vector<1x2x32xf32>
    "tpu.trace_stop"() : () -> ()
    %100 = vector.extract_strided_slice %99 {offsets = [0, 0, 0], sizes = [1, 1, 32], strides = [1, 1, 1]} : vector<1x2x32xf32> to vector<1x1x32xf32>
    %101 = arith.negf %100 : vector<1x1x32xf32>
    %102 = math.exp %101 : vector<1x1x32xf32>
    %cst_40 = arith.constant 1.000000e+00 : f32
    %103 = vector.broadcast %cst_40 : f32 to vector<1x1x32xf32>
    %104 = arith.addf %103, %102 : vector<1x1x32xf32>
    %105 = arith.divf %103, %104 : vector<1x1x32xf32>
    %106 = vector.extract_strided_slice %99 {offsets = [0, 1, 0], sizes = [1, 1, 32], strides = [1, 1, 1]} : vector<1x2x32xf32> to vector<1x1x32xf32>
    %cst_41 = arith.constant 0.000000e+00 : f32
    %107 = vector.broadcast %cst_41 : f32 to vector<1x1x32xf32>
    %108 = arith.maximumf %106, %107 : vector<1x1x32xf32>
    %109 = vector.broadcast %cst_41 : f32 to vector<1x1x32xf32>
    %110 = arith.subf %106, %109 : vector<1x1x32xf32>
    %111 = arith.cmpf one, %110, %110 : vector<1x1x32xf32>
    %112 = vector.broadcast %cst_41 : f32 to vector<1x1x32xf32>
    %113 = arith.addf %106, %112 : vector<1x1x32xf32>
    %114 = math.absf %110 : vector<1x1x32xf32>
    %cst_42 = arith.constant 0.000000e+00 : f32
    %115 = vector.broadcast %cst_42 : f32 to vector<1x1x32xf32>
    %116 = arith.subf %115, %114 : vector<1x1x32xf32>
    %117 = math.exp %116 : vector<1x1x32xf32>
    %118 = math.log1p %117 : vector<1x1x32xf32>
    %119 = arith.addf %108, %118 : vector<1x1x32xf32>
    %120 = arith.select %111, %113, %119 : vector<1x1x32xi1>, vector<1x1x32xf32>
    %cst_43 = arith.constant 9.99999974E-5 : f32
    %121 = vector.broadcast %cst_43 : f32 to vector<1x1x32xf32>
    %122 = arith.maximumf %120, %121 : vector<1x1x32xf32>
    %c0_44 = arith.constant 0 : index
    %c24 = arith.constant 24 : index
    %c0_45 = arith.constant 0 : index
    %123 = vector.load %arg5[%c0_44, %c24, %c0_45] : memref<1x26x32xf32, #tpu.memory_space<vmem>>, vector<1x1x32xf32>
    tpu.vector_store %arg5[%c0_44, %c24, %c0_45], %105 {strides = array<i32>} : memref<1x26x32xf32, #tpu.memory_space<vmem>>, vector<1x1x32xf32>,
    %c0_46 = arith.constant 0 : index
    %c25 = arith.constant 25 : index
    %c0_47 = arith.constant 0 : index
    %124 = vector.load %arg5[%c0_46, %c25, %c0_47] : memref<1x26x32xf32, #tpu.memory_space<vmem>>, vector<1x1x32xf32>
    tpu.vector_store %arg5[%c0_46, %c25, %c0_47], %122 {strides = array<i32>} : memref<1x26x32xf32, #tpu.memory_space<vmem>>, vector<1x1x32xf32>,
    return
  }
  func.func @transform_0(%arg0: i32) -> (i32, i32, i32) {
    %c0_i32 = arith.constant 0 : i32
    %c0_i32_0 = arith.constant 0 : i32
    %c0_i32_1 = arith.constant 0 : i32
    return %arg0, %c0_i32, %c0_i32_0 : i32, i32, i32
  }
  func.func @transform_1(%arg0: i32) -> (i32, i32, i32) {
    %c0_i32 = arith.constant 0 : i32
    %c0_i32_0 = arith.constant 0 : i32
    %c0_i32_1 = arith.constant 0 : i32
    return %arg0, %c0_i32, %c0_i32_0 : i32, i32, i32
  }
  func.func @transform_2(%arg0: i32) -> (i32, i32, i32) {
    %c0_i32 = arith.constant 0 : i32
    %c0_i32_0 = arith.constant 0 : i32
    %c0_i32_1 = arith.constant 0 : i32
    return %arg0, %c0_i32, %c0_i32_0 : i32, i32, i32
  }
  func.func @transform_3(%arg0: i32) -> (i32, i32) {
    %c0_i32 = arith.constant 0 : i32
    %c0_i32_0 = arith.constant 0 : i32
    %c0_i32_1 = arith.constant 0 : i32
    return %c0_i32, %c0_i32_0 : i32, i32
  }
  func.func @transform_4(%arg0: i32) -> (i32, i32, i32) {
    %c0_i32 = arith.constant 0 : i32
    %c0_i32_0 = arith.constant 0 : i32
    %c0_i32_1 = arith.constant 0 : i32
    return %arg0, %c0_i32, %c0_i32_0 : i32, i32, i32
  }
}

</mosaic_0001>

<bundles_post_ra>
// kernel: tpu_custom_call.1
= control target key start
LH: loop header
LB: loop body
LE: loop exit
PB: predicated region body
PF: predicated region fallthrough
CT: control target
= control target key end

     0   :  { %s1266_s15 = smov 0   ;;  %s1609_s0 = inlined_call_operand.vmem [shape: f32[2,16,32], index: 0, kind: input, shape index: {}]   ;;  %s1610_s1 = inlined_call_operand.vmem [shape: f32[2,16,64], index: 1, kind: input, shape index: {}]   ;;  %s1611_s2 = inlined_call_operand.vmem [shape: f32[2,32,32], index: 2, kind: input, shape index: {}]   ;;  %s1612_s3 = inlined_call_operand.vmem [shape: f32[232,64], index: 3, kind: input, shape index: {}]   ;;  %s1613_s4 = inlined_call_operand.vmem [shape: f32[2,26,32], index: 4, kind: output, shape index: {}]  }
   0x1 LB: > { %s1078_s16 = sadd.s32 4294967295, %s1236_s15   ;;  %p1082_p0 = scmp.ge.s32.totalorder %s1236_s15, 1  ;;  %s1236_s15 = sphi %s1266_s15, %s14_s15  }
   0x2   : > { %p182_p1 = scmp.lt.s32.totalorder %s1236_s15, 3 }
   0x4   : > { %p183_p2 = pnand %p1082_p0, %p182_p1 }
   0x5   : > { %p218_p3 = scmp.lt.s32.totalorder (!%p183_p2), %s1078_s16, 1  ;;  %s1240_s6 = smov (!%p183_p2), 96  }
   0x6   : > { %186 = sbr.rel (%p183_p2) target bundleno = 1237 (0x4d5), region = 36 }
   0xb   : > { %v249_v0 = vld [vmem:[%s1612_s3 + $0x38] sm:$0xff]  ;;  %v248_v1 = vld [vmem:[%s1612_s3 + $0x30] sm:$0xff]  ;;  %v247_v3 = vld [vmem:[%s1612_s3 + $0x28] sm:$0xff]  ;;  %s1623_s16 = smov (!%p218_p3, %s1078_s16), 1  ;;  %vm254_vm0 = vcmask 261120   ;;  %vm284_vm1 = vcmask 523264  }
   0xc   : > { %299 = vmatpush.msra.mxu1 %v249_v0  ;;  %v253_v2 = vld [vmem:[%s1612_s3 + $0x58] sm:$0xff]  ;;  %v252_v4 = vld [vmem:[%s1612_s3 + $0x50] sm:$0xff]  ;;  %v251_v5 = vld [vmem:[%s1612_s3 + $0x48] sm:$0xff]  ;;  %s1128_s5 = sshll.u32 %s1623_s16, 4  ;;  %vm360_vm10 = vcmask 130048   ;;  %s1130_s12 = sshll.u32 %s1623_s16, 5 }
   0xd   : > { %273 = vmatpush.msra.mxu0 %v253_v2  ;;  %v246_v6 = vld [vmem:[%s1612_s3 + $0x20] sm:$0xff]  ;;  %s222_s10 = scalar_lea.vmem %s1609_s0, %s1128_s5  ;;  %v245_v8 = vld [vmem:[%s1612_s3 + $0x18] sm:$0xff]  ;;  %v244_v10 = vld [vmem:[%s1612_s3 + $0x10] sm:$0xff]  ;;  %s227_s21 = scalar_lea.vmem %s1610_s1, %s1128_s5 }
   0xe   : > { %300 = vmatpush.msra.mxu1 %v248_v1  ;;  %v250_v7 = vld [vmem:[%s1612_s3 + $0x40] sm:$0xff]  ;;  %v243_v11 = vld [vmem:[%s1612_s3 + $0x8] sm:$0xff]  ;;  %v395_v32 = vld [vmem:[%s1612_s3 + $0x78] sm:$0xff]  ;;  %s1352_s17 = scalar_lea.vmem %s1613_s4, %s1130_s12 }
   0xf   : > { %274 = vmatpush.msra.mxu0 %v252_v4  ;;  %v1307_v9 = vld [vmem:[%s222_s10] sm:$0xff]  ;;  %v239_v14 = vld [vmem:[%s222_s10 + $0x8] sm:$0xff]  ;;  %v394_v33 = vld [vmem:[%s1612_s3 + $0x70] sm:$0xff]  ;;  %414 = vmatpush.msra.mxu3 %v395_v32 }
  0x10   : > { %301 = vmatpush.msra.mxu1 %v247_v3  ;;  %v242_v12 = vld [vmem:[%s1612_s3] sm:$0xff]  ;;  %v241_v15 = vld [vmem:[%s227_s21 + $0x8] sm:$0xff]  ;;  %v477_v63 = vld [vmem:[%s1612_s3 + $0xb8] sm:$0xff] }
  0x11   : > { %275 = vmatpush.msra.mxu0 %v251_v5  ;;  %v240_v13 = vld [vmem:[%s227_s21] sm:$0xff]  ;;  %v393_v35 = vld [vmem:[%s1612_s3 + $0x68] sm:$0xff]  ;;  %415 = vmatpush.msra.mxu3 %v394_v33  ;;  %s232_s21 = scalar_lea.vmem %s1611_s2, %s1130_s12  ;;  %v476_v4 = vld [vmem:[%s1612_s3 + $0xb0] sm:$0xff] }
  0x12   : > { %302 = vmatpush.msra.mxu1 %v246_v6  ;;  %v1155_v17 = vld [vmem:[%s1612_s3 + $0xc2] ss:$0 sm:$0xff]  ;;  %v359_v57 = vld [vmem:[%s1612_s3 + $0xa8] sm:$0xff]  ;;  %v427_v2 = vld [vmem:[%s232_s21 + $0x10] sm:$0xff] }
  0x13   : > { %276 = vmatpush.msra.mxu0 %v250_v7  ;;  %416 = vmatpush.msra.mxu3 %v393_v35  ;;  %v358_v56 = vld [vmem:[%s1612_s3 + $0xa0] sm:$0xff]  ;;  %v426_v1 = vld [vmem:[%s232_s21 + $0x8] sm:$0xff]  ;;  %v428_v3 = vld [vmem:[%s232_s21 + $0x18] sm:$0xff] }
  0x14   : > { %303 = vmatpush.msra.mxu1 %v245_v8  ;;  %1091 = vmatmul.msk.f32.vlgmr.msra.gmra.mxu0 %vm254_vm0, %v1307_v9  ;;  %v392_v58 = vld [vmem:[%s1612_s3 + $0x60] sm:$0xff]  ;;  %v908_v5 = vld [vmem:[%s1612_s3 + $0x98] sm:$0xff]  ;;  %v907_v6 = vld [vmem:[%s1612_s3 + $0x90] sm:$0xff] }
  0x15   : > { %417 = vmatpush.msra.mxu3 %v392_v58  ;;  %504 = vmatpush.msrb.mxu0 %v477_v63  ;;  %v425_v0 = vld [vmem:[%s232_s21] sm:$0xff]  ;;  %v906_v7 = vld [vmem:[%s1612_s3 + $0x88] sm:$0xff] }
  0x16   : > { %304 = vmatpush.msra.mxu1 %v244_v10  ;;  %v905_v8 = vld [vmem:[%s1612_s3 + $0x80] sm:$0xff] }
  0x17   : > { %505 = vmatpush.msrb.mxu0 %v476_v4 }
  0x18   : > { %305 = vmatpush.msra.mxu1 %v243_v11 }
  0x1a   : > { %306 = vmatpush.msra.mxu1 %v242_v12 }
  0x1b   : > { %1093 = vmatmul.msk.f32.vlgmr.msra.gmra.mxu1 %vm284_vm1, %v240_v13  ;;  %v1238_v13 = vmov 0  }
  0x1c   : > { %1092 = vmatmul.msk.f32.gmra.mxu0 %vm254_vm0, %v239_v14  ;;  %924 = vmatpush.msrb.mxu1 %v908_v5 }
  0x1d   : > { %1144 = vset.pattern.permute.xlu1 %v1238_v13  ;;  %1146 = vset.pattern.permute.xlu2 %v1238_v13 }
  0x1e   : > { %925 = vmatpush.msrb.mxu1 %v907_v6 }
  0x20   : > { %926 = vmatpush.msrb.mxu1 %v906_v7 }
  0x22   : > { %927 = vmatpush.msrb.mxu1 %v905_v8 }
  0x23   : > { %1094 = vmatmul.msk.f32.gmra.mxu1 %vm284_vm1, %v241_v15 }
  0x91   : > { %v278_v16 = vpop.f32.mrf.mxu0 }
  0x98   : > { %v308_v18 = vpop.f32.mrf.mxu1 }
  0x99   : > { %v309_v19 = vadd.f32 %v308_v18, %v278_v16  ;;  %v281_v22 = vpop.f32.mrf.mxu0 }
  0x9b   : > { %v316_v20 = vadd.f32 %v1155_v17, %v309_v19 }
  0x9d   : > { %v1095_v21 = vmul.f32 -1.442695, %v316_v20 }
  0x9f   : > { %1158 = vpow2.f32 %v1095_v21 }
  0xa0   : > { %v311_v23 = vpop.f32.mrf.mxu1 }
  0xa1   : > { %v312_v24 = vadd.f32 %v311_v23, %v281_v22 }
  0xa3   : > { %v317_v25 = vadd.f32 %v1155_v17, %v312_v24 }
  0xa5   : > { %v1159_v26 = vpop.eup %1158  ;;  %v1096_v27 = vmul.f32 -1.442695, %v317_v25 }
  0xa6   : > { %v324_v28 = vadd.f32 1.0, %v1159_v26 }
  0xa7   : > { %1160 = vpow2.f32 %v1096_v27 }
  0xa8   : > { %1162 = vrcp.f32 %v324_v28  ;;  %vm331_vm3 = vweird.f32 %v324_v28  ;;  %v337_v43 = vand.u32 2147483648, %v324_v28  ;;  %v335_v46 = vand.u32 2147483647, %v324_v28 }
  0xaa   : > { %v338_v50 = vor.u32 1.1754944e-38, %v337_v43  ;;  %vm336_vm9 = vcmp.eq.f32.partialorder %v335_v46, 8.507059e+37 }
  0xad   : > { %v1161_v29 = vpop.eup %1160 }
  0xae   : > { %v1163_v30 = vpop.eup %1162  ;;  %v325_v31 = vadd.f32 1.0, %v1161_v29 }
  0xaf   : > { %v327_v34 = vmul.f32 %v1163_v30, %v324_v28  ;;  %vm332_vm2 = vweird.f32 %v1163_v30 }
  0xb0   : > { %1164 = vrcp.f32 %v325_v31  ;;  %v352_v42 = vand.u32 2147483648, %v325_v31  ;;  %v350_v45 = vand.u32 2147483647, %v325_v31  ;;  %vm333_vm5 = vmor %vm331_vm3, %vm332_vm2  ;;  %vm346_vm6 = vweird.f32 %v325_v31 }
  0xb1   : > { %v328_v36 = vsub.f32 1.0, %v327_v34 }
  0xb2   : > { %v353_v49 = vor.u32 1.1754944e-38, %v352_v42  ;;  %vm351_vm8 = vcmp.eq.f32.partialorder %v350_v45, 8.507059e+37 }
  0xb3   : > { %v329_v37 = vmul.f32 %v1163_v30, %v328_v36 }
  0xb5   : > { %v330_v41 = vadd.f32 %v1163_v30, %v329_v37 }
  0xb6   : > { %v1165_v38 = vpop.eup %1164 }
  0xb7   : > { %v342_v39 = vmul.f32 %v1165_v38, %v325_v31  ;;  %vm347_vm4 = vweird.f32 %v1165_v38  ;;  %v334_v48 = vsel %vm333_vm5, %v1163_v30, %v330_v41 }
  0xb8   : > { %vm348_vm7 = vmor %vm346_vm6, %vm347_vm4  ;;  %v339_v53 = vsel %vm336_vm9, %v338_v50, %v334_v48 }
  0xb9   : > { %v343_v40 = vsub.f32 1.0, %v342_v39  ;;  %v356_v55 = vmul.f32 %v339_v53, %v1307_v9 }
  0xbb   : > { %v344_v44 = vmul.f32 %v1165_v38, %v343_v40 }
  0xbd   : > { %v345_v47 = vadd.f32 %v1165_v38, %v344_v44 }
  0xbf   : > { %v349_v51 = vsel %vm348_vm7, %v1165_v38, %v345_v47 }
  0xc0   : > { %v354_v52 = vsel %vm351_vm8, %v353_v49, %v349_v51 }
  0xc1   : > { %v357_v54 = vmul.f32 %v354_v52, %v239_v14  ;;  %v1239_v14 = vmov 1  }
  0xc2   : > { %1143 = vset.pattern.permute.xlu0 %v1239_v14 }
  0xc3   : > { %381 = vmatpush.msra.mxu2 %v357_v54 }
  0xc5   : > { %382 = vmatpush.msra.mxu2 %v356_v55 }
  0xc6   : > { %1097 = vmatmul.msk.f32.vlgmr.msra.gmra.mxu2 %vm360_vm10, %v358_v56 }
  0xce   : > { %1098 = vmatmul.msk.f32.gmra.mxu2 %vm360_vm10, %v359_v57 }
 0x149   : > { %v384_v59 = vpop.f32.mrf.mxu2 }
 0x14a   : > { %390 = vst.msk [vmem:[%s1352_s17 + $0x8] sm:$0xff] %vm254_vm0, %v384_v59  ;;  %1099 = vmatmul.msk.f32.vlgmr.msra.gmra.mxu3 %vm254_vm0, %v384_v59 }
 0x151   : > { %v387_v60 = vpop.f32.mrf.mxu2 }
 0x152   : > { %391 = vst.msk [vmem:[%s1352_s17 + $0x10] sm:$0xff] %vm254_vm0, %v387_v60  ;;  %1100 = vmatmul.msk.f32.gmra.mxu3 %vm254_vm0, %v387_v60 }
 0x1cd   : > { %v1360_v61 = vpop.f32.mrf.mxu3 }
 0x1d5   : > { %v1362_v62 = vpop.f32.mrf.mxu3 }
 0x1d6   : > { %1101 = vmatpush.xpose.msk.msrb.mxu2 %vm254_vm0, %v1362_v62 }
 0x1da   : > { %1102 = vmatpush.xpose.msk.msrb.mxu2 %vm254_vm0, %v1360_v61 }
 0x1dd   : > { %1103 = vmatmul.msk.f32.vlgmr.msrb.gmra.mxu2 %vm254_vm0, %v425_v0 }
 0x1e5   : > { %1104 = vmatmul.msk.f32.gmra.mxu2 %vm254_vm0, %v426_v1 }
 0x1ed   : > { %1105 = vmatmul.msk.f32.gmra.mxu2 %vm254_vm0, %v427_v2 }
 0x1f5   : > { %1106 = vmatmul.msk.f32.gmra.mxu2 %vm254_vm0, %v428_v3 }
 0x260   : > { %v464_v9 = vpop.f32.mrf.mxu2 }
 0x261   : > { %1107 = vmatmul.msk.f32.vlgmr.msrb.gmra.mxu0 %vm360_vm10, %v464_v9 }
 0x268   : > { %v467_v10 = vpop.f32.mrf.mxu2 }
 0x269   : > { %1108 = vmatmul.msk.f32.gmra.mxu0 %vm360_vm10, %v467_v10 }
 0x270   : > { %v470_v11 = vpop.f32.mrf.mxu2 }
 0x271   : > { %1109 = vmatmul.msk.f32.gmra.mxu0 %vm360_vm10, %v470_v11 }
 0x278   : > { %v473_v12 = vpop.f32.mrf.mxu2 }
 0x279   : > { %1110 = vmatmul.msk.f32.gmra.mxu0 %vm360_vm10, %v473_v12  ;;  %1120 = vmatpush.xpose.msk.msra.mxu1 %vm360_vm10, %v473_v12 }
 0x27d   : > { %1121 = vmatpush.xpose.msk.msra.mxu1 %vm360_vm10, %v470_v11 }
 0x281   : > { %1122 = vmatpush.xpose.msk.msra.mxu1 %vm360_vm10, %v467_v10 }
 0x285   : > { %1123 = vmatpush.xpose.msk.msra.mxu1 %vm360_vm10, %v464_v9 }
 0x2de   : > { %v1404_v15 = vpop.f32.mrf.mxu0 }
 0x2df   : > { %v1111_v16 = vmul.f32 -1.442695, %v1404_v15  ;;  %v607_v17 = vand.u32 2147483647, %v1404_v15  ;;  %v595_v45 = vmax.f32 %v1404_v15, 0.0  ;;  %vm599_vm12 = vcmp.ne.f32.partialorder %v1404_v15, %v1404_v15 }
 0x2e1   : > { %1166 = vpow2.f32 %v1111_v16  ;;  %v611_v18 = vsub.f32 0.0, %v607_v17 }
 0x2e3   : > { %v615_v19 = vmul.f32 1.442695, %v611_v18 }
 0x2e5   : > { %1168 = vpow2.f32 %v615_v19 }
 0x2e6   : > { %v1408_v20 = vpop.f32.mrf.mxu0 }
 0x2e7   : > { %v1167_v21 = vpop.eup %1166  ;;  %v1112_v22 = vmul.f32 -1.442695, %v1408_v20  ;;  %v608_v23 = vand.u32 2147483647, %v1408_v20  ;;  %vm600_vm6 = vcmp.ne.f32.partialorder %v1408_v20, %v1408_v20 }
 0x2e8   : > { %v531_v24 = vadd.f32 1.0, %v1167_v21 }
 0x2e9   : > { %1170 = vpow2.f32 %v1112_v22  ;;  %v612_v25 = vsub.f32 0.0, %v608_v23 }
 0x2ea   : > { %1172 = vrcp.f32 %v531_v24  ;;  %v544_v36 = vand.u32 2147483647, %v531_v24  ;;  %v546_v39 = vand.u32 2147483648, %v531_v24  ;;  %vm540_vm15 = vweird.f32 %v531_v24 }
 0x2eb   : > { %v1169_v26 = vpop.eup %1168  ;;  %v617_v27 = vmul.f32 1.442695, %v612_v25  ;;  %v596_v25 = vmax.f32 %v1408_v20, 0.0 }
 0x2ec   : > { %v623_v28 = vadd.f32 1.0, %v1169_v26  ;;  %v626_v30 = vmul.f32 -0.5, %v1169_v26  ;;  %v629_v41 = vand.u32 2147483647, %v1169_v26  ;;  %vm1420_vm11 = vcmp.eq.f32.partialorder %v544_v36, 8.507059e+37 }
 0x2ed   : > { %1174 = vpow2.f32 %v617_v27  ;;  %v547_v51 = vor.u32 1.1754944e-38, %v546_v39 }
 0x2ee   : > { %v1412_v29 = vpop.f32.mrf.mxu0  ;;  %1176 = vlog2.f32 %v623_v28  ;;  %v627_v40 = vadd.f32 1.0, %v626_v30  ;;  %vm1428_vm14 = vcmp.lt.f32.partialorder %v629_v41, 0.0004427343 }
 0x2ef   : > { %v1171_v31 = vpop.eup %1170  ;;  %v1113_v32 = vmul.f32 -1.442695, %v1412_v29  ;;  %v609_v33 = vand.u32 2147483647, %v1412_v29 }
 0x2f0   : > { %v1173_v34 = vpop.eup %1172  ;;  %v1416_v35 = vadd.f32 1.0, %v1171_v31  ;;  %v628_v54 = vmul.f32 %v1169_v26, %v627_v40 }
 0x2f1   : > { %1178 = vpow2.f32 %v1113_v32  ;;  %v613_v37 = vsub.f32 0.0, %v609_v33  ;;  %v536_v38 = vmul.f32 %v1173_v34, %v531_v24  ;;  %vm541_vm13 = vweird.f32 %v1173_v34 }
 0x2f2   : > { %1180 = vrcp.f32 %v1416_v35  ;;  %v559_v59 = vand.u32 2147483647, %v1416_v35  ;;  %vm542_vm1 = vmor %vm540_vm15, %vm541_vm13  ;;  %v561_v7 = vand.u32 2147483648, %v1416_v35  ;;  %vm555_vm4 = vweird.f32 %v1416_v35 }
 0x2f3   : > { %v1175_v42 = vpop.eup %1174  ;;  %v619_v43 = vmul.f32 1.442695, %v613_v37  ;;  %v537_v44 = vsub.f32 1.0, %v536_v38 }
 0x2f4   : > { %v1177_v46 = vpop.eup %1176  ;;  %v632_v48 = vadd.f32 1.0, %v1175_v42  ;;  %v635_v49 = vmul.f32 -0.5, %v1175_v42  ;;  %v638_v8 = vand.u32 2147483647, %v1175_v42  ;;  %v562_v31 = vor.u32 1.1754944e-38, %v561_v7 }
 0x2f5   : > { %1182 = vpow2.f32 %v619_v43  ;;  %v538_v50 = vmul.f32 %v1173_v34, %v537_v44  ;;  %v625_v52 = vmul.f32 0.6931472, %v1177_v46  ;;  %vm560_vm7 = vcmp.eq.f32.partialorder %v559_v59, 8.507059e+37 }
 0x2f6   : > { %v1426_v53 = vpop.f32.mrf.mxu0  ;;  %1184 = vlog2.f32 %v632_v48  ;;  %v636_v2 = vadd.f32 1.0, %v635_v49  ;;  %vm639_vm3 = vcmp.lt.f32.partialorder %v638_v8, 0.0004427343  ;;  %v597_v48 = vmax.f32 %v1412_v29, 0.0 }
 0x2f7   : > { %v1179_v56 = vpop.eup %1178  ;;  %v1114_v57 = vmul.f32 -1.442695, %v1426_v53  ;;  %v610_v58 = vand.u32 2147483647, %v1426_v53  ;;  %v539_v0 = vadd.f32 %v1173_v34, %v538_v50  ;;  %v631_v1 = vsel %vm1428_vm14, %v628_v54, %v625_v52 }
 0x2f8   : > { %v1181_v60 = vpop.eup %1180  ;;  %v1435_v63 = vadd.f32 1.0, %v1179_v56  ;;  %v659_v4 = vadd.f32 %v631_v1, %v595_v45  ;;  %v637_v19 = vmul.f32 %v1175_v42, %v636_v2  ;;  %v598_v2 = vmax.f32 %v1426_v53, 0.0 }
 0x2f9   : > { %1186 = vpow2.f32 %v1114_v57  ;;  %v614_v3 = vsub.f32 0.0, %v610_v58  ;;  %v551_v5 = vmul.f32 %v1181_v60, %v1416_v35  ;;  %v543_v6 = vsel %vm542_vm1, %v1173_v34, %v539_v0 }
 0x2fa   : > { %1188 = vrcp.f32 %v1435_v63  ;;  %v548_v11 = vsel %vm1420_vm11, %v547_v51, %v543_v6  ;;  %v663_v12 = vsel %vm599_vm12, %v1404_v15, %v659_v4  ;;  %vm556_vm2 = vweird.f32 %v1181_v60 }
 0x2fb   : > { %v1183_v9 = vpop.eup %1182  ;;  %v621_v10 = vmul.f32 1.442695, %v614_v3  ;;  %v552_v16 = vsub.f32 1.0, %v551_v5  ;;  %700 = vperm.xlu1 %1144, %v548_v11   ;;  %v667_v18 = vmax.f32 %v663_v12, 0.0001  ;;  %vm557_vm5 = vmor %vm555_vm4, %vm556_vm2  ;;  %v576_v55 = vand.u32 2147483648, %v1435_v63 }
 0x2fc   : > { %v1185_v17 = vpop.eup %1184  ;;  %v641_v21 = vadd.f32 1.0, %v1183_v9  ;;  %v644_v24 = vmul.f32 -0.5, %v1183_v9  ;;  %v647_v38 = vand.u32 2147483647, %v1183_v9  ;;  %vm601_vm11 = vcmp.ne.f32.partialorder %v1412_v29, %v1412_v29 }
 0x2fd   : > { %1190 = vpow2.f32 %v621_v10  ;;  %v553_v22 = vmul.f32 %v1181_v60, %v552_v16  ;;  %v634_v23 = vmul.f32 0.6931472, %v1185_v17  ;;  %674 = vperm.xlu0 %1143, %v667_v18   ;;  %vm570_vm12 = vweird.f32 %v1435_v63 }
 0x2fe   : > { %1192 = vlog2.f32 %v641_v21  ;;  %v645_v34 = vadd.f32 1.0, %v644_v24  ;;  %vm648_vm8 = vcmp.lt.f32.partialorder %v647_v38, 0.0004427343  ;;  %v574_v56 = vand.u32 2147483647, %v1435_v63 }
 0x2ff   : > { %v1187_v26 = vpop.eup %1186  ;;  %v554_v27 = vadd.f32 %v1181_v60, %v553_v22  ;;  %v640_v15 = vsel %vm639_vm3, %v637_v19, %v634_v23  ;;  %v577_v3 = vor.u32 1.1754944e-38, %v576_v55  ;;  %vm602_vm1 = vcmp.ne.f32.partialorder %v1426_v53, %v1426_v53 }
 0x300   : > { %v1189_v28 = vpop.eup %1188  ;;  %v1451_v30 = vadd.f32 1.0, %v1187_v26  ;;  %v660_v32 = vadd.f32 %v640_v15, %v596_v25  ;;  %v646_v46 = vmul.f32 %v1183_v9, %v645_v34  ;;  %vm575_vm15 = vcmp.eq.f32.partialorder %v574_v56, 8.507059e+37 }
 0x301   : > { %v558_v33 = vsel %vm557_vm5, %v1181_v60, %v554_v27  ;;  %v566_v36 = vmul.f32 %v1189_v28, %v1435_v63  ;;  %vm571_vm9 = vweird.f32 %v1189_v28  ;;  %v1149_v8 = vpack.i.bf16 %v1360_v61, %v1362_v62  ;;  %v1157_v61 = vld [vmem:[%s1612_s3 + $0xc4] ss:$0 sm:$0xff] }
 0x302   : > { %1194 = vrcp.f32 %v1451_v30  ;;  %v563_v37 = vsel %vm560_vm7, %v562_v31, %v558_v33  ;;  %v664_v35 = vsel %vm600_vm6, %v1408_v20, %v660_v32  ;;  %vm572_vm13 = vmor %vm570_vm12, %vm571_vm9  ;;  %vm585_vm2 = vweird.f32 %v1451_v30 }
 0x303   : > { %v1191_v39 = vpop.eup %1190  ;;  %705 = vperm.xlu2 %1146, %v563_v37   ;;  %v668_v40 = vmax.f32 %v664_v35, 0.0001  ;;  %v567_v41 = vsub.f32 1.0, %v566_v36  ;;  %1145 = vset.pattern.permute.xlu1 %v1239_v14  ;;  %v591_v10 = vand.u32 2147483648, %v1451_v30  ;;  %v589_v12 = vand.u32 2147483647, %v1451_v30 }
 0x304   : > { %v1193_v42 = vpop.eup %1192  ;;  %v650_v43 = vadd.f32 1.0, %v1191_v39  ;;  %v653_v44 = vmul.f32 -0.5, %v1191_v39  ;;  %v656_v52 = vand.u32 2147483647, %v1191_v39 }
 0x305   : > { %v643_v45 = vmul.f32 0.6931472, %v1193_v42  ;;  %v568_v47 = vmul.f32 %v1189_v28, %v567_v41  ;;  %679 = vperm.xlu0 %1143, %v668_v40   ;;  %v592_v16 = vor.u32 1.1754944e-38, %v591_v10  ;;  %vm590_vm5 = vcmp.eq.f32.partialorder %v589_v12, 8.507059e+37 }
 0x306   : > { %1196 = vlog2.f32 %v650_v43  ;;  %v654_v49 = vadd.f32 1.0, %v653_v44  ;;  %vm657_vm14 = vcmp.lt.f32.partialorder %v656_v52, 0.0004427343 }
 0x307   : > { %v649_v20 = vsel %vm648_vm8, %v646_v46, %v643_v45  ;;  %v569_v50 = vadd.f32 %v1189_v28, %v568_v47 }
 0x308   : > { %v1195_v51 = vpop.eup %1194  ;;  %v661_v54 = vadd.f32 %v649_v20, %v597_v48  ;;  %v655_v59 = vmul.f32 %v1191_v39, %v654_v49 }
 0x309   : > { %v581_v57 = vmul.f32 %v1195_v51, %v1451_v30  ;;  %v573_v0 = vsel %vm572_vm13, %v1189_v28, %v569_v50  ;;  %vm586_vm3 = vweird.f32 %v1195_v51 }
 0x30a   : > { %v665_v58 = vsel %vm601_vm11, %v1412_v29, %v661_v54  ;;  %v578_v63 = vsel %vm575_vm15, %v577_v3, %v573_v0  ;;  %vm587_vm4 = vmor %vm585_vm2, %vm586_vm3 }
 0x30b   : > { %v669_v60 = vmax.f32 %v665_v58, 0.0001  ;;  %1147 = vset.pattern.permute.xlu2 %v1239_v14  ;;  %v582_v4 = vsub.f32 1.0, %v581_v57 }
 0x30c   : > { %v1197_v1 = vpop.eup %1196 }
 0x30d   : > { %v652_v5 = vmul.f32 0.6931472, %v1197_v1  ;;  %684 = vperm.xlu1 %1145, %v669_v60   ;;  %1148 = vset.pattern.permute.xlu0 %v1238_v13  ;;  %v583_v7 = vmul.f32 %v1195_v51, %v582_v4 }
 0x30e   : > { %710 = vperm.xlu0 %1148, %v578_v63  }
 0x30f   : > { %v658_v6 = vsel %vm657_vm14, %v655_v59, %v652_v5  ;;  %v584_v11 = vadd.f32 %v1195_v51, %v583_v7 }
 0x310   : > { %v662_v29 = vadd.f32 %v658_v6, %v598_v2 }
 0x311   : > { %v588_v17 = vsel %vm587_vm4, %v1195_v51, %v584_v11 }
 0x312   : > { %v666_v14 = vsel %vm602_vm1, %v1426_v53, %v662_v29  ;;  %v593_v53 = vsel %vm590_vm5, %v592_v16, %v588_v17 }
 0x313   : > { %v670_v9 = vmax.f32 %v666_v14, 0.0001 }
 0x315   : > { %1150 = vrot.lane.b32.xlu1 %v1149_v8, %s1240_s6  ;;  %689 = vperm.xlu2 %1147, %v670_v9  }
 0x31d   : > { %1154 = vset.pattern.permute.xlu2 %v1238_v13  ;;  %v1492_v13 = vld [vmem:[%s1612_s3 + $0xc3] ss:$0 sm:$0xff] }
 0x31e   : > { %715 = vperm.xlu2 %1154, %v593_v53  }
 0x35d   : > { %v706_v18 = vpop.permute.xlu2 %705 }
 0x35e   : > { %v720_v30 = vsub.f32 %v706_v18, %v1492_v13 }
 0x360   : > { %v724_v35 = vmul.f32 %v720_v30, %v720_v30 }
 0x362   : > { %v728_v49 = vmul.f32 -0.5, %v724_v35 }
 0x36d   : > { %v701_v24 = vpop.permute.xlu1 %700 }
 0x36e   : > { %v719_v31 = vsub.f32 %v701_v24, %v1492_v13 }
 0x36f   : > { %v690_v62 = vpop.permute.xlu2 %689  ;;  %v675_v19 = vpop.permute.xlu0 %674 }
 0x370   : > { %v693_v21 = vadd.f32 %v1157_v61, %v675_v19  ;;  %v1483_v22 = vadd.f32 %v1157_v61, %v690_v62  ;;  %v723_v38 = vmul.f32 %v719_v31, %v719_v31 }
 0x372   : > { %1198 = vrcp.f32 %v693_v21  ;;  %v1485_v23 = vmul.f32 6.2831855, %v693_v21  ;;  %v742_v42 = vand.u32 2147483648, %v693_v21  ;;  %v740_v45 = vand.u32 2147483647, %v693_v21 }
 0x373   : > { %1200 = vrcp.f32 %v1483_v22  ;;  %v1515_v47 = vmul.f32 6.2831855, %v1483_v22  ;;  %vm736_vm7 = vweird.f32 %v693_v21  ;;  %v727_v20 = vmul.f32 -0.5, %v723_v38 }
 0x374   : > { %1202 = vrsqrt.f32 %v1485_v23  ;;  %v743_v52 = vor.u32 1.1754944e-38, %v742_v42  ;;  %vm741_vm9 = vcmp.eq.f32.partialorder %v740_v45, 8.507059e+37  ;;  %vm809_vm11 = vweird.f32 %v1485_v23 }
 0x375   : > { %vm781_vm4 = vweird.f32 %v1483_v22  ;;  %v785_v35 = vand.u32 2147483647, %v1483_v22  ;;  %v787_v38 = vand.u32 2147483648, %v1483_v22 }
 0x377   : > { %v680_v25 = vpop.permute.xlu0 %679 }
 0x378   : > { %v1199_v26 = vpop.eup %1198  ;;  %v1494_v27 = vadd.f32 %v1157_v61, %v680_v25  ;;  %v716_v53 = vpop.permute.xlu2 %715 }
 0x379   : > { %v732_v15 = vmul.f32 %v1199_v26, %v693_v21  ;;  %v1496_v28 = vpop.eup %1200  ;;  %vm737_vm6 = vweird.f32 %v1199_v26  ;;  %v722_v30 = vsub.f32 %v716_v53, %v1492_v13 }
 0x37a   : > { %1204 = vrcp.f32 %v1494_v27  ;;  %v1501_v32 = vpop.eup %1202  ;;  %v1504_v34 = vmul.f32 6.2831855, %v1494_v27  ;;  %v777_v39 = vmul.f32 %v1496_v28, %v1483_v22  ;;  %vm738_vm8 = vmor %vm736_vm7, %vm737_vm6  ;;  %v757_v56 = vand.u32 2147483648, %v1494_v27 }
 0x37b   : > { %v733_v33 = vsub.f32 1.0, %v732_v15  ;;  %v804_v36 = vmul.f32 %v1501_v32, %v1485_v23  ;;  %v755_v59 = vand.u32 2147483647, %v1494_v27  ;;  %vm810_vm13 = vweird.f32 %v1501_v32 }
 0x37c   : > { %1206 = vrsqrt.f32 %v1504_v34  ;;  %v778_v50 = vsub.f32 1.0, %v777_v39  ;;  %vm751_vm14 = vweird.f32 %v1494_v27  ;;  %v758_v7 = vor.u32 1.1754944e-38, %v757_v56  ;;  %vm1552_vm6 = vmor %vm809_vm11, %vm810_vm13 }
 0x37d   : > { %v734_v37 = vmul.f32 %v1199_v26, %v733_v33  ;;  %v805_v46 = vmul.f32 %v1501_v32, %v804_v36  ;;  %vm756_vm1 = vcmp.eq.f32.partialorder %v755_v59, 8.507059e+37  ;;  %vm782_vm3 = vweird.f32 %v1496_v28 }
 0x37e   : > { %v779_v2 = vmul.f32 %v1496_v28, %v778_v50  ;;  %v788_v50 = vor.u32 1.1754944e-38, %v787_v38  ;;  %vm819_vm13 = vweird.f32 %v1504_v34 }
 0x37f   : > { %v685_v40 = vpop.permute.xlu1 %684  ;;  %v735_v41 = vadd.f32 %v1199_v26, %v734_v37  ;;  %v806_v58 = vmul.f32 0.5, %v805_v46 }
 0x380   : > { %v1511_v43 = vadd.f32 %v1157_v61, %v685_v40  ;;  %v1205_v44 = vpop.eup %1204  ;;  %v711_v57 = vpop.permute.xlu0 %710  ;;  %v780_v15 = vadd.f32 %v1496_v28, %v779_v2 }
 0x381   : > { %v747_v48 = vmul.f32 %v1205_v44, %v1494_v27  ;;  %v739_v55 = vsel %vm738_vm8, %v1199_v26, %v735_v41  ;;  %vm752_vm12 = vweird.f32 %v1205_v44  ;;  %v721_v63 = vsub.f32 %v711_v57, %v1492_v13  ;;  %vm1558_vm8 = vmor %vm781_vm4, %vm782_vm3 }
 0x382   : > { %1208 = vrcp.f32 %v1511_v43  ;;  %v1519_v51 = vpop.eup %1206  ;;  %v744_v0 = vsel %vm741_vm9, %v743_v52, %v739_v55  ;;  %v807_v9 = vsub.f32 1.5, %v806_v58  ;;  %vm753_vm15 = vmor %vm751_vm14, %vm752_vm12  ;;  %v1535_v16 = vmul.f32 6.2831855, %v1511_v43 }
 0x383   : > { %v748_v54 = vsub.f32 1.0, %v747_v48  ;;  %1210 = vrsqrt.f32 %v1515_v47  ;;  %v814_v1 = vmul.f32 %v1519_v51, %v1504_v34  ;;  %v745_v4 = vmul.f32 %v744_v0, %v727_v20 }
 0x384   : > { %v770_v19 = vand.u32 2147483647, %v1511_v43  ;;  %v772_v21 = vand.u32 2147483648, %v1511_v43  ;;  %v725_v26 = vmul.f32 %v721_v63, %v721_v63  ;;  %v808_v27 = vmul.f32 %v1501_v32, %v807_v9 }
 0x385   : > { %v749_v60 = vmul.f32 %v1205_v44, %v748_v54  ;;  %v791_v8 = vmul.f32 1.442695, %v745_v4  ;;  %v815_v10 = vmul.f32 %v1519_v51, %v814_v1  ;;  %vm766_vm5 = vweird.f32 %v1511_v43 }
 0x386   : > { %v773_v13 = vor.u32 1.1754944e-38, %v772_v21  ;;  %vm771_vm9 = vcmp.eq.f32.partialorder %v770_v19, 8.507059e+37  ;;  %v729_v23 = vmul.f32 -0.5, %v725_v26  ;;  %v812_v42 = vsel %vm1552_vm6, %v1501_v32, %v808_v27 }
 0x387   : > { %v1151_v3 = vpop.permute.xlu1 %1150  ;;  %v750_v29 = vadd.f32 %v1205_v44, %v749_v60  ;;  %1212 = vpow2.f32 %v791_v8  ;;  %v816_v62 = vmul.f32 0.5, %v815_v10  ;;  %v784_v22 = vsel %vm1558_vm8, %v1496_v28, %v780_v15  ;;  %v848_v10 = vld [vmem:[%s1612_s3 + $0xcd] sm:$0xff] }
 0x388   : > { %v1209_v5 = vpop.eup %1208  ;;  %v1152_v6 = vunpack.i.l.bf16 %v1151_v3  ;;  %v1153_v11 = vunpack.i.h.bf16 %v1151_v3  ;;  %1214 = vrsqrt.f32 %v1535_v16  ;;  %vm820_vm11 = vweird.f32 %v1519_v51 }
 0x389   : > { %v762_v14 = vmul.f32 %v1209_v5, %v1511_v43  ;;  %v754_v12 = vsel %vm753_vm15, %v1205_v44, %v750_v29  ;;  %v1537_v17 = vpop.eup %1210  ;;  %vm767_vm2 = vweird.f32 %v1209_v5  ;;  %v817_v37 = vsub.f32 1.5, %v816_v62  ;;  %vm821_vm14 = vmor %vm819_vm13, %vm820_vm11 }
 0x38a   : > { %883 = vmatpush.msrb.mxu3 %v1152_v6  ;;  %v759_v61 = vsel %vm756_vm1, %v758_v7, %v754_v12  ;;  %vm768_vm7 = vmor %vm766_vm5, %vm767_vm2  ;;  %v726_v44 = vmul.f32 %v722_v30, %v722_v30  ;;  %vm786_vm12 = vcmp.eq.f32.partialorder %v785_v35, 8.507059e+37  ;;  %v834_v28 = vmul.f32 %v1537_v17, %v1515_v47  ;;  %v847_v12 = vld [vmem:[%s1612_s3 + $0xc5] sm:$0xff] }
 0x38b   : > { %v763_v18 = vsub.f32 1.0, %v762_v14  ;;  %v760_v24 = vmul.f32 %v759_v61, %v728_v49  ;;  %v818_v49 = vmul.f32 %v1519_v51, %v817_v37  ;;  %v789_v55 = vsel %vm786_vm12, %v788_v50, %v784_v22 }
 0x38c   : > { %884 = vmatpush.msrb.mxu3 %v1153_v11  ;;  %v730_v56 = vmul.f32 -0.5, %v726_v44  ;;  %v835_v1 = vmul.f32 %v1537_v17, %v834_v28  ;;  %vm829_vm1 = vweird.f32 %v1535_v16  ;;  %vm840_vm3 = vweird.f32 %v1537_v17 }
 0x38d   : > { %v764_v25 = vmul.f32 %v1209_v5, %v763_v18  ;;  %v793_v31 = vmul.f32 1.442695, %v760_v24  ;;  %v1213_v39 = vpop.eup %1212  ;;  %v822_v57 = vsel %vm821_vm14, %v1519_v51, %v818_v49  ;;  %vm839_vm4 = vweird.f32 %v1515_v47  ;;  %v849_v47 = vld [vmem:[%s1612_s3 + $0xd5] sm:$0xff]  ;;  %v850_v18 = vld [vmem:[%s1612_s3 + $0xdd] sm:$0xff] }
 0x38e   : > { %v1215_v43 = vpop.eup %1214  ;;  %v843_v46 = vmul.f32 %v1213_v39, %v812_v42  ;;  %v790_v60 = vmul.f32 %v789_v55, %v730_v56  ;;  %v836_v4 = vmul.f32 0.5, %v835_v1  ;;  %vm841_vm5 = vmor %vm839_vm4, %vm840_vm3  ;;  %vm995_vm8 = vcmask 253952  }
 0x38f   : > { %v765_v33 = vadd.f32 %v1209_v5, %v764_v25  ;;  %1216 = vpow2.f32 %v793_v31  ;;  %v824_v20 = vmul.f32 %v1215_v43, %v1535_v16  ;;  %vm830_vm15 = vweird.f32 %v1215_v43  ;;  %v933_v25 = vld [vmem:[%s1612_s3 + $0xc0] sm:$0x3] }
 0x390   : > { %1115 = vmatmul.msk.f32.vlgmr.msrb.gmra.mxu3 %vm360_vm10, %v843_v46  ;;  %v797_v3 = vmul.f32 1.442695, %v790_v60  ;;  %vm831_vm2 = vmor %vm829_vm1, %vm830_vm15  ;;  %v837_v51 = vsub.f32 1.5, %v836_v4  ;;  %vm997_vm12 = vcmask 254977  }
 0x391   : > { %v769_v41 = vsel %vm768_vm7, %v1209_v5, %v765_v33  ;;  %v825_v52 = vmul.f32 %v1215_v43, %v824_v20 }
 0x392   : > { %v774_v45 = vsel %vm771_vm9, %v773_v13, %v769_v41  ;;  %v838_v6 = vmul.f32 %v1537_v17, %v837_v51 }
 0x393   : > { %v775_v48 = vmul.f32 %v774_v45, %v729_v23  ;;  %v826_v58 = vmul.f32 0.5, %v825_v52 }
 0x394   : > { %v842_v7 = vsel %vm841_vm5, %v1537_v17, %v838_v6 }
 0x395   : > { %v795_v32 = vmul.f32 1.442695, %v775_v48  ;;  %v1217_v54 = vpop.eup %1216  ;;  %v827_v0 = vsub.f32 1.5, %v826_v58 }
 0x396   : > { %v844_v59 = vmul.f32 %v1217_v54, %v822_v57 }
 0x397   : > { %1218 = vpow2.f32 %v795_v32  ;;  %v828_v2 = vmul.f32 %v1215_v43, %v827_v0 }
 0x398   : > { %1116 = vmatmul.msk.f32.gmra.mxu3 %vm360_vm10, %v844_v59  ;;  %1220 = vpow2.f32 %v797_v3 }
 0x399   : > { %v832_v5 = vsel %vm831_vm2, %v1215_v43, %v828_v2 }
 0x39d   : > { %v1219_v34 = vpop.eup %1218 }
 0x39e   : > { %v845_v63 = vmul.f32 %v1219_v34, %v832_v5  ;;  %v1221_v29 = vpop.eup %1220 }
 0x39f   : > { %v846_v14 = vmul.f32 %v1221_v29, %v842_v7 }
 0x3a0   : > { %1117 = vmatmul.msk.f32.gmra.mxu3 %vm360_vm10, %v845_v63 }
 0x3a8   : > { %1118 = vmatmul.msk.f32.gmra.mxu3 %vm360_vm10, %v846_v14 }
 0x413   : > { %v886_v8 = vpop.f32.mrf.mxu3 }
 0x414   : > { %v898_v17 = vmul.f32 %v886_v8, %v847_v12 }
 0x41b   : > { %v889_v9 = vpop.f32.mrf.mxu3 }
 0x41c   : > { %v899_v16 = vmul.f32 %v889_v9, %v848_v10 }
 0x41e   : > { %v902_v61 = vadd.f32 %v899_v16, %v898_v17 }
 0x423   : > { %v892_v11 = vpop.f32.mrf.mxu3 }
 0x424   : > { %v900_v53 = vmul.f32 %v892_v11, %v849_v47 }
 0x426   : > { %v903_v19 = vadd.f32 %v902_v61, %v900_v53 }
 0x42b   : > { %v895_v62 = vpop.f32.mrf.mxu3 }
 0x42c   : > { %v901_v21 = vmul.f32 %v895_v62, %v850_v18 }
 0x42e   : > { %v904_v24 = vadd.f32 %v903_v19, %v901_v21 }
 0x430   : > { %1119 = vmatmul.msk.f32.vlgmr.msrb.gmra.mxu1 %vm254_vm0, %v904_v24 }
 0x438   : > { %1124 = vmatmul.msk.f32.vlgmr.msra.gmra.mxu1 %vm360_vm10, %v933_v25 }
 0x4ad   : > { %v929_v26 = vpop.f32.mrf.mxu1 }
 0x4ae   : > { %932 = vst.msk [vmem:[%s1352_s17] sm:$0xff] %vm254_vm0, %v929_v26 }
 0x4b5   : > { %v954_v27 = vpop.f32.mrf.mxu1 }
 0x4b6   : > { %v1125_v15 = vmul.f32 -1.442695, %v954_v27  ;;  %v979_v30 = vand.u32 2147483647, %v954_v27  ;;  %v976_v49 = vmax.f32 %v954_v27, 0.0  ;;  %vm977_vm11 = vcmp.ne.f32.partialorder %v954_v27, %v954_v27 }
 0x4b8   : > { %1222 = vpow2.f32 %v1125_v15  ;;  %v980_v31 = vsub.f32 0.0, %v979_v30 }
 0x4ba   : > { %v981_v33 = vmul.f32 1.442695, %v980_v31 }
 0x4bc   : > { %1224 = vpow2.f32 %v981_v33 }
 0x4be   : > { %v1223_v36 = vpop.eup %1222 }
 0x4bf   : > { %v960_v37 = vadd.f32 1.0, %v1223_v36 }
 0x4c1   : > { %1226 = vrcp.f32 %v960_v37  ;;  %v970_v22 = vand.u32 2147483647, %v960_v37  ;;  %v972_v44 = vand.u32 2147483648, %v960_v37  ;;  %vm966_vm6 = vweird.f32 %v960_v37 }
 0x4c2   : > { %v1225_v35 = vpop.eup %1224 }
 0x4c3   : > { %v983_v38 = vadd.f32 1.0, %v1225_v35  ;;  %v986_v13 = vmul.f32 -0.5, %v1225_v35  ;;  %v989_v23 = vand.u32 2147483647, %v1225_v35  ;;  %v973_v32 = vor.u32 1.1754944e-38, %v972_v44 }
 0x4c4   : > { %vm971_vm9 = vcmp.eq.f32.partialorder %v970_v22, 8.507059e+37 }
 0x4c5   : > { %1228 = vlog2.f32 %v983_v38  ;;  %v987_v41 = vadd.f32 1.0, %v986_v13  ;;  %vm990_vm10 = vcmp.lt.f32.partialorder %v989_v23, 0.0004427343 }
 0x4c7   : > { %v1227_v39 = vpop.eup %1226  ;;  %v988_v48 = vmul.f32 %v1225_v35, %v987_v41 }
 0x4c8   : > { %v962_v40 = vmul.f32 %v1227_v39, %v960_v37  ;;  %vm967_vm0 = vweird.f32 %v1227_v39 }
 0x4c9   : > { %vm968_vm7 = vmor %vm966_vm6, %vm967_vm0 }
 0x4ca   : > { %v963_v42 = vsub.f32 1.0, %v962_v40 }
 0x4cb   : > { %v1229_v43 = vpop.eup %1228 }
 0x4cc   : > { %v964_v45 = vmul.f32 %v1227_v39, %v963_v42  ;;  %v985_v46 = vmul.f32 0.6931472, %v1229_v43 }
 0x4ce   : > { %v965_v20 = vadd.f32 %v1227_v39, %v964_v45  ;;  %v991_v50 = vsel %vm990_vm10, %v988_v48, %v985_v46 }
 0x4cf   : > { %v992_v52 = vadd.f32 %v991_v50, %v976_v49 }
 0x4d0   : > { %v969_v28 = vsel %vm968_vm7, %v1227_v39, %v965_v20 }
 0x4d1   : > { %v974_v54 = vsel %vm971_vm9, %v973_v32, %v969_v28  ;;  %v993_v55 = vsel %vm977_vm11, %v954_v27, %v992_v52 }
 0x4d2   : > { %v994_v56 = vmax.f32 %v993_v55, 0.0001  ;;  %996 = vst.msk [vmem:[%s1352_s17 + $0x18] sm:$0x1] %vm995_vm8, %v974_v54 }
 0x4d4   : > { %998 = vst.msk [vmem:[%s1352_s17 + $0x18] sm:$0x2] %vm997_vm12, %v994_v56 }
 0x4d5 PF: > { %s14_s15 = sadd.s32 1, %s1236_s15  }
 0x4d6   : > { %p11_p4 = scmp.ge.s32.totalorder %s14_s15, 4  }
 0x4d8   :  { %13 = sbr.rel (!%p11_p4) target bundleno = 1 (0x1), region = 72 }

</bundles_post_ra>
